<compile_context>
chip_gen: v7x
topology: tpu7x:2x2x1
jax: 0.10.0
libtpu: 0.0.40
codegen_flags: <defaults>
</compile_context>

<pallas_src>
import functools

import jax
import jax.numpy as jnp
from jax.experimental import pallas as pl
from jax.experimental.pallas import tpu as pltpu


def _round_up(x, m):
    return ((x + m - 1) // m) * m


def _cdiv(a, b):
    return (a + b - 1) // b


# ----------------------------------------------------------------------------- kernel
def _quad_poly_kernel(w_ref, p_ref, o_ref, *, rank, o_pad, use_sqrt, eps):
    # w_ref : (Op*(1+rank), Kp)  fused [linear | quadratic] weights, bias in column K
    # p_ref : (Kp, tm)           transposed im2col patch tile (+ all-ones bias row)
    # o_ref : (Op, tm)           lane-dense output tile (spatial on the lane axis)
    Op = o_pad

    # single MXU pass: (Op*(1+rank), Kp) @ (Kp, tm) -> f32 (Op*(1+rank), tm)
    z = jnp.dot(w_ref[...], p_ref[...], preferred_element_type=jnp.float32)

    lin = z[0:Op, :]                                   # linear conv (+ bias) rows
    # rank reduction accumulated directly from z: no (rank*Op, tm) intermediates
    qsum = None
    for r in range(rank):
        qr = z[Op * (1 + r):Op * (2 + r), :]           # Op % 8 == 0 -> sublane aligned
        qsum = qr * qr if qsum is None else qsum + qr * qr

    if use_sqrt:
        qsum = jnp.sqrt(qsum + eps)

    o_ref[...] = (qsum + lin).astype(o_ref.dtype)


# ------------------------------------------------------------------------------- glue
def _im2col_nchw(x, kh, kw, stride, padding, dtype):
    """x: (N, C, H, W) -> per-image patches (N, C*kh*kw, Ho*Wo).

    K ordering is (C, kh, kw) to match PyTorch OIHW weight flattening; column order
    within an image is row-major (ho, wo).
    """
    N, C, H, W = x.shape
    xp = jnp.pad(x, ((0, 0), (0, 0), (padding, padding), (padding, padding)))
    Ho = (H + 2 * padding - kh) // stride + 1
    Wo = (W + 2 * padding - kw) // stride + 1
    cols = []
    for i in range(kh):
        for j in range(kw):
            cols.append(xp[:, :, i:i + stride * Ho:stride, j:j + stride * Wo:stride])
    p = jnp.stack(cols, axis=2)                        # (N, C, kh*kw, Ho, Wo)
    p = p.reshape(N, C * kh * kw, Ho * Wo).astype(dtype)
    # TODO(synk): fully fuse patch extraction into the kernel (keep x in HBM with
    # memory_space=pl.ANY and manually DMA row-bands into VMEM) so the kh*kw-times
    # larger patch stream is never materialized in HBM.
    return p, Ho, Wo


# VMEM budget for streamed tiles: fits v7x (64 MiB/TC) with headroom while being well
# above the 32 MiB scoped default on v6e/v7x.  (v5e/v6e could go ~2x higher; kept
# conservative for portability.)
_VMEM_TILE_BUDGET = 40 * 1024 * 1024
_VMEM_LIMIT_BYTES = 48 * 1024 * 1024


@functools.partial(
    jax.jit,
    static_argnames=("rank", "stride", "padding", "use_sqrt", "eps", "tm_max",
                     "compute_dtype"))
def quadratic_polynomial_conv2d(x, w_lin, b_lin, w_quad, *, rank, stride=1, padding=0,
                                use_sqrt=False, eps=1e-6, tm_max=8192,
                                compute_dtype=jnp.bfloat16):
    """h(x) = sum_r (A_r * x)^2 + b * x + c (conv).  NCHW in, NCHW float32 out."""
    N, C, H, W = x.shape
    O, _, kh, kw = w_lin.shape
    assert w_quad.shape[0] == O * rank

    in_bytes = jnp.dtype(compute_dtype).itemsize
    kp_align = 16 if in_bytes == 2 else 8              # bf16 sublane packing
    K = C * kh * kw
    Kp = _round_up(K + 1, kp_align)                    # +1 all-ones row folds the bias in
    Op = _round_up(O, 8)                               # sublane-aligned rank slices of z
    O_rows = Op * (1 + rank)

    # ---- per-image im2col (streamed operand), cast to compute_dtype early
    p, Ho, Wo = _im2col_nchw(x, kh, kw, stride, padding, compute_dtype)
    Hw = Ho * Wo

    # ---- tile size: as large as the VMEM budget allows, balanced over the image so the
    #      last tile isn't mostly padding; guarantee >= 2 grid steps for v7x megacore.
    per_col = (2 * Kp * in_bytes                       # patch double buffer
               + 2 * Op * 4                            # output double buffer (f32)
               + (O_rows + Op) * 4)                    # z + qsum intermediates (f32)
    budget = _VMEM_TILE_BUDGET - 2 * O_rows * Kp * in_bytes   # resident weight buffers
    tm_cap = max(128, (budget // per_col) // 128 * 128)
    tm_target = max(128, min(tm_cap, tm_max, _round_up(Hw, 128)))
    num_j = _cdiv(Hw, tm_target)
    if N * num_j < 2 and Hw > 128:
        num_j = 2
    tm = _round_up(_cdiv(Hw, num_j), 128)
    Hw_pad = num_j * tm

    # bias row + padding via concat/pad (fusable in XLA; no zeros + scatter copy)
    ones = jnp.ones((N, 1, Hw), dtype=compute_dtype)
    p = jnp.concatenate([p, ones], axis=1)                           # (N, K+1, Hw)
    p = jnp.pad(p, ((0, 0), (0, Kp - (K + 1)), (0, Hw_pad - Hw)))    # (N, Kp, Hw_pad)

    # ---- fused weights: rows [0:O] = linear (+ bias in column K),
    #      quadratic rank-group r occupies rows [Op*(1+r) : Op*(1+r)+O]
    w_all = jnp.zeros((O_rows, Kp), dtype=compute_dtype)
    w_all = w_all.at[:O, :K].set(w_lin.reshape(O, K).astype(compute_dtype))
    w_all = w_all.at[:O, K].set(b_lin.astype(compute_dtype))
    wq = w_quad.reshape(rank, O, K).astype(compute_dtype)
    for r in range(rank):
        w_all = w_all.at[Op * (1 + r):Op * (1 + r) + O, :K].set(wq[r])

    kernel = functools.partial(_quad_poly_kernel, rank=rank, o_pad=Op,
                               use_sqrt=use_sqrt, eps=eps)

    out = pl.pallas_call(
        kernel,
        out_shape=jax.ShapeDtypeStruct((N, Op, Hw_pad), jnp.float32),
        grid_spec=pltpu.PrefetchScalarGridSpec(
            num_scalar_prefetch=0,
            grid=(N, num_j),
            in_specs=[
                pl.BlockSpec((O_rows, Kp), lambda n, j: (0, 0)),       # resident weights
                pl.BlockSpec((None, Kp, tm), lambda n, j: (n, 0, j)),  # streamed patches
            ],
            out_specs=pl.BlockSpec((None, Op, tm), lambda n, j: (n, 0, j)),
        ),
        compiler_params=pltpu.CompilerParams(
            dimension_semantics=("parallel", "parallel"),
            vmem_limit_bytes=_VMEM_LIMIT_BYTES),
    )(w_all, p)

    # blocks were written n-major already -> NCHW needs only slice + reshape (no transpose)
    return out[:, :O, :Hw].reshape(N, O, Ho, Wo)


# ------------------------------------------------------------------------- reference
def _reference(x, w_lin, b_lin, w_quad, *, rank, stride, padding, use_sqrt, eps):
    dn = ("NCHW", "OIHW", "NCHW")
    pad = [(padding, padding), (padding, padding)]
    lin = jax.lax.conv_general_dilated(x, w_lin, (stride, stride), pad,
                                       dimension_numbers=dn)
    lin = lin + b_lin[None, :, None, None]
    q = jax.lax.conv_general_dilated(x, w_quad, (stride, stride), pad,
                                     dimension_numbers=dn) ** 2
    N, _, Ho, Wo = q.shape
    O = w_lin.shape[0]
    q = q.reshape(N, rank, O, Ho, Wo).sum(1)
    if use_sqrt:
        q = jnp.sqrt(q + eps)
    return q + lin


# ------------------------------------------------------------------------------ main
if __name__ == "__main__":
    # module config (matches the nn.Conv2d shapes in __init__)
    N, C, H, W = 2, 4, 16, 16
    O, rank, ksz = 8, 2, 3
    stride, padding = 1, 1
    use_sqrt, eps = False, 1e-6

    key = jax.random.PRNGKey(0)
    kx, kwl, kbl, kwq = jax.random.split(key, 4)

    x = jax.random.normal(kx, (N, C, H, W), dtype=jnp.float32)
    w_lin = jax.random.normal(kwl, (O, C, ksz, ksz), dtype=jnp.float32) * 0.1
    b_lin = jax.random.normal(kbl, (O,), dtype=jnp.float32) * 0.1
    w_quad = jax.random.normal(kwq, (O * rank, C, ksz, ksz), dtype=jnp.float32) * 0.1

    out = quadratic_polynomial_conv2d(
        x, w_lin, b_lin, w_quad,
        rank=rank, stride=stride, padding=padding, use_sqrt=use_sqrt, eps=eps)
    out = jax.block_until_ready(out)
    assert out.shape == (N, O, H, W), out.shape

    # tight check vs a reference fed the kernel's bf16-quantized inputs
    bf = lambda a: a.astype(jnp.bfloat16).astype(jnp.float32)
    ref_q = _reference(bf(x), bf(w_lin), bf(b_lin), bf(w_quad),
                       rank=rank, stride=stride, padding=padding,
                       use_sqrt=use_sqrt, eps=eps)
    assert jnp.allclose(out, ref_q, rtol=2e-3, atol=2e-3), \
        float(jnp.max(jnp.abs(out - ref_q)))

    # sanity check vs the full-precision reference (bf16 MXU inputs -> looser tolerance)
    ref = _reference(x, w_lin, b_lin, w_quad,
                     rank=rank, stride=stride, padding=padding,
                     use_sqrt=use_sqrt, eps=eps)
    assert jnp.allclose(out, ref, rtol=5e-2, atol=5e-2), \
        float(jnp.max(jnp.abs(out - ref)))

    print("KERNEL_OK")
</pallas_src>

<mosaic_0001>
module attributes {stable_mosaic.version = 11 : i64} {
  func.func @_quad_poly_kernel(%arg0: i32, %arg1: i32, %arg2: memref<24x48xbf16, #tpu.memory_space<vmem>>, %arg3: memref<1x48x256xbf16, #tpu.memory_space<vmem>>, %arg4: memref<1x8x256xf32, #tpu.memory_space<vmem>>) attributes {dimension_semantics = [#tpu.dimension_semantics<parallel>, #tpu.dimension_semantics<parallel>], iteration_bounds = array<i64: 2, 1>, scalar_prefetch = 0 : i64, scratch_operands = 0 : i64, tpu.core_type = #tpu.core_type<tc>, window_params = [{pipeline_mode = #tpu.pipeline_mode<synchronous>, transform_indices = @transform_0, window_bounds = array<i64: 24, 48>}, {transform_indices = @transform_1, window_bounds = array<i64: 1, 48, 256>}, {transform_indices = @transform_2, window_bounds = array<i64: 1, 8, 256>}]} {
    %c0 = arith.constant 0 : index
    %c0_0 = arith.constant 0 : index
    %0 = vector.load %arg2[%c0, %c0_0] : memref<24x48xbf16, #tpu.memory_space<vmem>>, vector<24x48xbf16>
    %c0_1 = arith.constant 0 : index
    %c0_2 = arith.constant 0 : index
    %c0_3 = arith.constant 0 : index
    %1 = vector.load %arg3[%c0_1, %c0_2, %c0_3] : memref<1x48x256xbf16, #tpu.memory_space<vmem>>, vector<1x48x256xbf16>
    %2 = vector.shape_cast %1 : vector<1x48x256xbf16> to vector<48x256xbf16>
    %cst = arith.constant dense<0.000000e+00> : vector<24x256xf32>
    %3 = tpu.matmul %0, %2, %cst {dimension_numbers = #tpu.dot_dimension_numbers<[1], [0], [0], [1], [0, 0, 1, 1], [], []>} : vector<24x48xbf16>, vector<48x256xbf16>, vector<24x256xf32> -> vector<24x256xf32>
    %4 = vector.extract_strided_slice %3 {offsets = [0, 0], sizes = [8, 256], strides = [1, 1]} : vector<24x256xf32> to vector<8x256xf32>
    %5 = vector.extract_strided_slice %3 {offsets = [8, 0], sizes = [8, 256], strides = [1, 1]} : vector<24x256xf32> to vector<8x256xf32>
    %6 = arith.mulf %5, %5 : vector<8x256xf32>
    %7 = vector.extract_strided_slice %3 {offsets = [16, 0], sizes = [8, 256], strides = [1, 1]} : vector<24x256xf32> to vector<8x256xf32>
    %8 = arith.mulf %7, %7 : vector<8x256xf32>
    %9 = arith.addf %6, %8 : vector<8x256xf32>
    %10 = arith.addf %9, %4 : vector<8x256xf32>
    %c0_4 = arith.constant 0 : index
    %c0_5 = arith.constant 0 : index
    %c0_6 = arith.constant 0 : index
    %11 = vector.load %arg4[%c0_4, %c0_5, %c0_6] : memref<1x8x256xf32, #tpu.memory_space<vmem>>, vector<1x8x256xf32>
    %12 = vector.shape_cast %11 : vector<1x8x256xf32> to vector<8x256xf32>
    %13 = vector.shape_cast %10 : vector<8x256xf32> to vector<1x8x256xf32>
    tpu.vector_store %arg4[%c0_4, %c0_5, %c0_6], %13 {strides = array<i32>} : memref<1x8x256xf32, #tpu.memory_space<vmem>>, vector<1x8x256xf32>,
    return
  }
  func.func @transform_0(%arg0: i32, %arg1: i32) -> (i32, i32) {
    %c0_i32 = arith.constant 0 : i32
    %c0_i32_0 = arith.constant 0 : i32
    %c0_i32_1 = arith.constant 0 : i32
    return %c0_i32, %c0_i32_0 : i32, i32
  }
  func.func @transform_1(%arg0: i32, %arg1: i32) -> (i32, i32, i32) {
    %c0_i32 = arith.constant 0 : i32
    %c0_i32_0 = arith.constant 0 : i32
    return %arg0, %c0_i32, %arg1 : i32, i32, i32
  }
  func.func @transform_2(%arg0: i32, %arg1: i32) -> (i32, i32, i32) {
    %c0_i32 = arith.constant 0 : i32
    %c0_i32_0 = arith.constant 0 : i32
    return %arg0, %c0_i32, %arg1 : i32, i32, i32
  }
}

</mosaic_0001>

<bundles_post_ra>
// kernel: quadratic_polynomial_conv2d.1
= control target key start
LH: loop header
LB: loop body
LE: loop exit
PB: predicated region body
PF: predicated region fallthrough
CT: control target
= control target key end

     0   :  { %s490_s9 = smov 0   ;;  %s492_s10 = smov 0   ;;  %s533_s0 = inlined_call_operand.vmem [shape: bf16[24,48], index: 0, kind: input, shape index: {}]   ;;  %s534_s1 = inlined_call_operand.vmem [shape: bf16[2,48,256], index: 1, kind: input, shape index: {}]   ;;  %s535_s2 = inlined_call_operand.vmem [shape: f32[2,8,256], index: 2, kind: output, shape index: {}]  }
   0x1   :  { %s494_s11 = smov 0  }
   0x2 LB: > { %s24_s12 = sadd.s32 1, %s468_s10  ;;  %p390_p0 = scmp.ge.s32.totalorder %s472_s11, 1  ;;  %s472_s11 = sphi %s494_s11, %s12_s11   ;;  %s468_s10 = sphi %s492_s10, %s537_s10   ;;  %s464_s9 = sphi %s490_s9, %s536_s9  }
   0x3   : > { %p26_p1 = scmp.ge.s32.totalorder %s24_s12, 2  ;;  %p133_p2 = scmp.lt.s32.totalorder %s472_s11, 3 }
   0x5   : > { %s539_s12 = smov (%p26_p1, %s24_s12), 0  ;;  %p134_p3 = pnand %p390_p0, %p133_p2 }
   0x6   : > { %p164_p4 = scmp.lt.s32.totalorder (!%p134_p3), %s464_s9, 1  ;;  %v474_v0 = vmov (!%p134_p3), 0   ;;  %v448_v7 = vld [vmem:[%s533_s0] sm:$0xff] (!%p134_p3)   ;;  %v449_v8 = vld [vmem:[%s533_s0 + $0x8] ss:$0 sps:$4 sm:$0xff] (!%p134_p3)   ;;  %vm231_vm0 = vcmask (!%p134_p3), 392192  }
   0x7   : > { %137 = sbr.rel (%p134_p3) target bundleno = 253 (0xfd), region = 28  ;;  %270 = vmatprep.mubr.bf16.mxu0 (!%p134_p3), %v474_v0  ;;  %280 = vmatprep.mubr.bf16.mxu1 (!%p134_p3), %v474_v0 }
   0xe   : > { %s541_s9 = smov (!%p164_p4, %s464_s9), 1 }
   0xf   : > { %s413_s13 = smul.u32 48, %s541_s9  ;;  %s406_s21 = sshll.u32 %s541_s9, 4 }
  0x10   : > { %s181_s24 = scalar_lea.vmem %s535_s2, %s406_s21 }
  0x11   : > { %s171_s16 = scalar_lea.vmem %s534_s1, %s413_s13 }
  0x12   : > { %v439_v1 = vld [vmem:[%s171_s16 + $0x4] ss:$8 sps:$4 sm:$0xff]   ;;  %v441_v2 = vld [vmem:[%s171_s16] ss:$8 sps:$4 sm:$0xff]   ;;  %v442_v3 = vld [vmem:[%s171_s16 + $0x14] ss:$8 sps:$4 sm:$0xff]  }
  0x13   : > { %238 = vmatprep.subr.bf16.mxu0 %v439_v1  ;;  %407 = vmatprep.subr.bf16.mxu1 %v439_v1  ;;  %v444_v4 = vld [vmem:[%s171_s16 + $0x10] ss:$8 sps:$4 sm:$0xff]   ;;  %v445_v5 = vld [vmem:[%s171_s16 + $0x24] ss:$8 sps:$4 sm:$0xff]   ;;  %v447_v6 = vld [vmem:[%s171_s16 + $0x20] ss:$8 sps:$4 sm:$0xff]  }
  0x14   : > { %239 = vmatpush1.bf16.msra.mxu0 %v441_v2  ;;  %410 = vmatpush1.bf16.msra.mxu1 %v441_v2 }
  0x15   : > { %240 = vmatprep.subr.bf16.mxu0 %v442_v3  ;;  %408 = vmatprep.subr.bf16.mxu1 %v442_v3 }
  0x18   : > { %241 = vmatpush1.bf16.msra.mxu0 %v444_v4  ;;  %411 = vmatpush1.bf16.msra.mxu1 %v444_v4 }
  0x19   : > { %242 = vmatprep.subr.bf16.mxu0 %v445_v5  ;;  %409 = vmatprep.subr.bf16.mxu1 %v445_v5 }
  0x1c   : > { %243 = vmatpush1.bf16.msra.mxu0 %v447_v6  ;;  %412 = vmatpush1.bf16.msra.mxu1 %v447_v6 }
  0x1f   : > { %402 = vmatmul.mubr.msk.bf16.vlgmr.msra.gmra.mrb[0].mxu0 %vm231_vm0, %v448_v7  ;;  %403 = vmatmul.mubr.msk.bf16.vlgmr.msra.gmra.mrb[0].mxu1 %vm231_vm0, %v449_v8 }
  0xf2   : > { %v272_v9 = vpop.f32.mrb[0].mxu0  ;;  %v282_v10 = vpop.f32.mrb[0].mxu1 }
  0xf3   : > { %v291_v11 = vmul.f32 %v282_v10, %v282_v10  ;;  %v274_v12 = vpop.f32.mrb[1].mxu0  ;;  %v284_v13 = vpop.f32.mrb[1].mxu1 }
  0xf4   : > { %v292_v14 = vmul.f32 %v284_v13, %v284_v13  ;;  %v276_v15 = vpop.f32.mrb[2].mxu0  ;;  %v286_v16 = vpop.f32.mrb[2].mxu1 }
  0xf5   : > { %v289_v17 = vmul.f32 %v276_v15, %v276_v15  ;;  %v278_v18 = vpop.f32.mrb[3].mxu0  ;;  %v287_v19 = vpop.f32.mrb[3].mxu1 }
  0xf6   : > { %v290_v20 = vmul.f32 %v278_v18, %v278_v18 }
  0xf7   : > { %v293_v21 = vadd.f32 %v291_v11, %v289_v17 }
  0xf8   : > { %v294_v22 = vadd.f32 %v292_v14, %v290_v20 }
  0xf9   : > { %v295_v23 = vadd.f32 %v293_v21, %v272_v9 }
  0xfa   : > { %v296_v24 = vadd.f32 %v294_v22, %v274_v12 }
  0xfb   : > { %297 = vst [vmem:[%s181_s24] sm:$0xff] %v295_v23 }
  0xfc   : > { %298 = vst [vmem:[%s181_s24 + $0x8] sm:$0xff] %v296_v24 }
  0xfd PF: > { %s12_s11 = sadd.s32 1, %s472_s11   ;;  %s536_s9 = smov %s468_s10 }
  0xfe   : > { %p9_p5 = scmp.ge.s32.totalorder %s12_s11, 4   ;;  %s537_s10 = smov %s539_s12 }
 0x100   :  { %11 = sbr.rel (!%p9_p5) target bundleno = 2 (0x2), region = 58 }

</bundles_post_ra>
